<compile_context>
chip_gen: v7x
topology: tpu7x:2x2x1
jax: 0.10.0
libtpu: 0.0.40
codegen_flags: <defaults>
</compile_context>

<pallas_src>
import math

import jax
import jax.numpy as jnp
from jax import lax
from jax.experimental import pallas as pl
from jax.experimental.pallas import tpu as pltpu


def _round_up(n, m):
    return ((n + m - 1) // m) * m


def _mlp_kernel(x_ref, w1_ref, w2_ref, out_ref):
    """Fused Linear -> ReLU -> Linear for one batch tile.

    x_ref  : (TM, in_dim)           activations (f32 or bf16)
    w1_ref : (in_dim, hidden_pad)   pre-transposed + zero-padded, VMEM-resident
    w2_ref : (out_dim, hidden_pad)  zero-padded along hidden (f32), VMEM-resident
    out_ref: (1, out_dim, TM)       lane-dense output slab block
    """
    x = x_ref[...]
    if x.dtype != w1_ref.dtype:
        # Per-tile cast (hidden under DMA/MXU time) instead of a wrapper-side
        # astype, which would be an extra full HBM read+write pass over x.
        x = x.astype(w1_ref.dtype)

    # Layer 1 on the MXU, f32 accumulation.
    h = jnp.dot(x, w1_ref[...], preferred_element_type=jnp.float32)
    # ReLU on the VPU in f32 (v5e's VPU has no bf16 path).  Padded hidden lanes
    # are exactly 0 (x @ zero-columns) and meet zero w2 columns below, so the
    # hidden padding never changes results.
    feat = jnp.maximum(h, 0.0)

    # Layer 2: contract the hidden (last) dim of BOTH operands (no transpose),
    # producing (out_dim, TM) — batch on lanes -> unmasked, lane-dense stores.
    out = lax.dot_general(
        w2_ref[...], feat,
        dimension_numbers=(((1,), (1,)), ((), ())),
        preferred_element_type=jnp.float32)
    out_ref[...] = out[None].astype(out_ref.dtype)


def prepare_params(w1, w2, *, use_bf16=True):
    """One-time weight preparation (do at init time, NOT per forward call).

    w1: (hidden, in_dim)  PyTorch nn.Linear weight layout
    w2: (out_dim, hidden)
    Returns:
      w1p: (in_dim, hidden_pad)  transposed once, zero-padded to 128 lanes,
                                 bf16 by default (layer 1 uses f32 accumulation)
      w2p: (out_dim, hidden_pad) zero-padded along hidden (kept f32)
    """
    hidden, in_dim = w1.shape
    out_dim = w2.shape[0]
    hidden_pad = _round_up(hidden, 128)
    wdtype = jnp.bfloat16 if use_bf16 else jnp.float32

    w1p = jnp.zeros((in_dim, hidden_pad), wdtype)
    w1p = w1p.at[:, :hidden].set(w1.T.astype(wdtype))
    w2p = jnp.zeros((out_dim, hidden_pad), jnp.float32)
    w2p = w2p.at[:, :hidden].set(w2.astype(jnp.float32))
    return w1p, w2p


def _pick_tm(B, in_dim, x_itemsize, tm=None):
    """Batch tile selection: big tiles (mem-bound), >=2 balanced tiles for v7x,
    capped against the v7x VMEM budget."""
    if tm is None:
        tm = 2048 if x_itemsize <= 2 else 1024
        # v7x has 2 TensorCores: aim for >= 2 balanced batch tiles at large B.
        if B >= 512:
            tm = min(tm, max(256, ((B // 2) // 256) * 256))
    # VMEM cap: keep the double-buffered x tiles under ~16 MiB
    # (v7x: 64 MiB physical / 32 MiB scoped default).
    cap = max(256, ((16 << 20) // (2 * in_dim * x_itemsize) // 256) * 256)
    tm = min(tm, cap, B)
    if tm < B:
        tm = max(8, (tm // 8) * 8)   # sublane-aligned unless tm == B (full dim)
    return tm


def one_hidden_layer_forward(x, w1p, w2p, *, tm=None):
    """out = linear2(relu(linear1(x))), weights already prepared by prepare_params.

    x   : (B, in_dim) f32 or bf16 (bf16 at rest halves x's HBM traffic)
    w1p : (in_dim, hidden_pad)
    w2p : (out_dim, hidden_pad)
    returns (B, out_dim) float32
    """
    B, in_dim = x.shape
    hidden_pad = w1p.shape[1]
    out_dim = w2p.shape[0]
    x_bytes = jnp.dtype(x.dtype).itemsize
    w1_bytes = jnp.dtype(w1p.dtype).itemsize

    tm = _pick_tm(B, in_dim, x_bytes, tm)
    num_tiles = pl.cdiv(B, tm)

    # Explicit VMEM budget: double-buffered x/out blocks + resident weights + slack.
    vmem_need = (2 * tm * in_dim * x_bytes
                 + 2 * in_dim * hidden_pad * w1_bytes
                 + 2 * out_dim * hidden_pad * 4
                 + 2 * out_dim * tm * 4)
    vmem_limit = int(min(max(2 * vmem_need, 32 << 20), 64 << 20))

    flops = 2 * B * in_dim * hidden_pad + 2 * B * hidden_pad * out_dim
    bytes_accessed = (B * in_dim * x_bytes
                      + in_dim * hidden_pad * w1_bytes
                      + out_dim * hidden_pad * 4
                      + num_tiles * out_dim * tm * 4)

    out_slab = pl.pallas_call(
        _mlp_kernel,
        out_shape=jax.ShapeDtypeStruct((num_tiles, out_dim, tm), jnp.float32),
        grid_spec=pltpu.PrefetchScalarGridSpec(
            num_scalar_prefetch=0,
            grid=(num_tiles,),
            in_specs=[
                # Batch-tiled activations: double-buffered DMA overlaps MXU work.
                pl.BlockSpec((tm, in_dim), lambda i: (i, 0)),
                # Constant block index -> weights stay resident in VMEM across steps.
                pl.BlockSpec((in_dim, hidden_pad), lambda i: (0, 0)),
                pl.BlockSpec((out_dim, hidden_pad), lambda i: (0, 0)),
            ],
            # Lane-dense output slab: batch dim on lanes -> unmasked stores.
            out_specs=pl.BlockSpec((1, out_dim, tm), lambda i: (i, 0, 0)),
        ),
        compiler_params=pltpu.CompilerParams(
            dimension_semantics=("parallel",),   # batch tiles shard across v7x's 2 TCs
            vmem_limit_bytes=vmem_limit,
        ),
        cost_estimate=pl.CostEstimate(
            flops=flops, transcendentals=0, bytes_accessed=bytes_accessed),
    )(x, w1p, w2p)

    # (num_tiles, out_dim, tm) -> (B, out_dim); slice off the garbage rows of a
    # partial trailing tile before returning.
    out = jnp.swapaxes(out_slab, 1, 2).reshape(num_tiles * tm, out_dim)
    return out[:B]


def init_params(key, in_dim, hidden_dim, out_dim, scale=1.0, lambda1=1.0):
    """Deterministic init mirroring OneHiddenLayer.__init__ (uniform ranges)."""
    k1, k2 = jax.random.split(key)
    stdv1 = 1.0 / math.sqrt(lambda1 * in_dim)
    w1 = jax.random.uniform(
        k1, (hidden_dim, in_dim), jnp.float32,
        minval=-scale * stdv1, maxval=scale * stdv1)
    stdv2 = 1.0 / math.sqrt(hidden_dim)
    w2 = jax.random.uniform(
        k2, (out_dim, hidden_dim), jnp.float32,
        minval=-scale * stdv2, maxval=scale * stdv2)
    return w1, w2


def _ref_forward(x, w1, w2, *, bf16_layer1=True):
    """Pure-JAX reference matching the forward semantics of the PyTorch module."""
    if bf16_layer1:
        h = jnp.dot(x.astype(jnp.bfloat16), w1.T.astype(jnp.bfloat16),
                    preferred_element_type=jnp.float32)
    else:
        h = jnp.dot(x, w1.T, precision=lax.Precision.HIGHEST)
    feat = jnp.maximum(h, 0.0)
    return jnp.dot(feat, w2.T, precision=lax.Precision.HIGHEST)


if __name__ == "__main__":
    # Shapes consistent with the module defaults: in_dim=28*28, hidden=100, out_dim=1.
    IN_DIM, HIDDEN, OUT_DIM = 28 * 28, 100, 1

    key = jax.random.PRNGKey(0)
    kx1, kx2, kp = jax.random.split(key, 3)
    w1, w2 = init_params(kp, IN_DIM, HIDDEN, OUT_DIM, scale=1.0, lambda1=1.0)

    # One-time weight prep (transpose + pad; bf16 layer-1 weights by default).
    w1p, w2p = prepare_params(w1, w2, use_bf16=True)

    # Case 1: tiny batch (single grid step; latency/overhead bound by design).
    x1 = jax.random.normal(kx1, (8, IN_DIM), dtype=jnp.float32)
    out1 = jax.block_until_ready(one_hidden_layer_forward(x1, w1p, w2p))
    assert out1.shape == (8, OUT_DIM)
    assert jnp.allclose(out1, _ref_forward(x1, w1, w2, bf16_layer1=True),
                        atol=5e-3, rtol=5e-3)
    assert jnp.allclose(out1, _ref_forward(x1, w1, w2, bf16_layer1=False),
                        atol=3e-2, rtol=3e-2)

    # Case 2: multi-tile grid with a partial trailing tile (exercises pipelining,
    # the lane-dense output slab, and the wrapper-side garbage-row slicing).
    x2 = jax.random.normal(kx2, (300, IN_DIM), dtype=jnp.float32)
    out2 = jax.block_until_ready(one_hidden_layer_forward(x2, w1p, w2p, tm=128))
    assert out2.shape == (300, OUT_DIM)
    assert jnp.allclose(out2, _ref_forward(x2, w1, w2, bf16_layer1=True),
                        atol=5e-3, rtol=5e-3)

    print("KERNEL_OK")
</pallas_src>

<mosaic_0001>
module attributes {stable_mosaic.version = 11 : i64} {
  func.func @_mlp_kernel(%arg0: i32, %arg1: memref<8x784xf32, #tpu.memory_space<vmem>>, %arg2: memref<784x128xbf16, #tpu.memory_space<vmem>>, %arg3: memref<1x128xf32, #tpu.memory_space<vmem>>, %arg4: memref<1x1x8xf32, #tpu.memory_space<vmem>>) attributes {dimension_semantics = [#tpu.dimension_semantics<parallel>], iteration_bounds = array<i64: 1>, scalar_prefetch = 0 : i64, scratch_operands = 0 : i64, tpu.core_type = #tpu.core_type<tc>, window_params = [{transform_indices = @transform_0, window_bounds = array<i64: 8, 784>}, {pipeline_mode = #tpu.pipeline_mode<synchronous>, transform_indices = @transform_1, window_bounds = array<i64: 784, 128>}, {pipeline_mode = #tpu.pipeline_mode<synchronous>, transform_indices = @transform_2, window_bounds = array<i64: 1, 128>}, {transform_indices = @transform_3, window_bounds = array<i64: 1, 1, 8>}]} {
    %c0 = arith.constant 0 : index
    %c0_0 = arith.constant 0 : index
    %0 = vector.load %arg1[%c0, %c0_0] : memref<8x784xf32, #tpu.memory_space<vmem>>, vector<8x784xf32>
    %1 = arith.truncf %0 : vector<8x784xf32> to vector<8x784xbf16>
    %c0_1 = arith.constant 0 : index
    %c0_2 = arith.constant 0 : index
    %2 = vector.load %arg2[%c0_1, %c0_2] : memref<784x128xbf16, #tpu.memory_space<vmem>>, vector<784x128xbf16>
    %cst = arith.constant dense<0.000000e+00> : vector<8x128xf32>
    %3 = tpu.matmul %1, %2, %cst {dimension_numbers = #tpu.dot_dimension_numbers<[1], [0], [0], [1], [0, 0, 1, 1], [], []>} : vector<8x784xbf16>, vector<784x128xbf16>, vector<8x128xf32> -> vector<8x128xf32>
    %cst_3 = arith.constant 0.000000e+00 : f32
    %4 = vector.broadcast %cst_3 : f32 to vector<8x128xf32>
    %5 = arith.maximumf %3, %4 : vector<8x128xf32>
    %c0_4 = arith.constant 0 : index
    %c0_5 = arith.constant 0 : index
    %6 = vector.load %arg3[%c0_4, %c0_5] : memref<1x128xf32, #tpu.memory_space<vmem>>, vector<1x128xf32>
    %cst_6 = arith.constant dense<0.000000e+00> : vector<1x8xf32>
    %7 = tpu.matmul %6, %5, %cst_6 {dimension_numbers = #tpu.dot_dimension_numbers<[1], [1], [0], [0], [0, 0, 1, 0], [], []>} : vector<1x128xf32>, vector<8x128xf32>, vector<1x8xf32> -> vector<1x8xf32>
    %8 = vector.shape_cast %7 : vector<1x8xf32> to vector<1x1x8xf32>
    %c0_7 = arith.constant 0 : index
    %c0_8 = arith.constant 0 : index
    %c0_9 = arith.constant 0 : index
    %9 = vector.load %arg4[%c0_7, %c0_8, %c0_9] : memref<1x1x8xf32, #tpu.memory_space<vmem>>, vector<1x1x8xf32>
    tpu.vector_store %arg4[%c0_7, %c0_8, %c0_9], %8 {strides = array<i32>} : memref<1x1x8xf32, #tpu.memory_space<vmem>>, vector<1x1x8xf32>,
    return
  }
  func.func @transform_0(%arg0: i32) -> (i32, i32) {
    %c0_i32 = arith.constant 0 : i32
    %c0_i32_0 = arith.constant 0 : i32
    return %arg0, %c0_i32 : i32, i32
  }
  func.func @transform_1(%arg0: i32) -> (i32, i32) {
    %c0_i32 = arith.constant 0 : i32
    %c0_i32_0 = arith.constant 0 : i32
    %c0_i32_1 = arith.constant 0 : i32
    return %c0_i32, %c0_i32_0 : i32, i32
  }
  func.func @transform_2(%arg0: i32) -> (i32, i32) {
    %c0_i32 = arith.constant 0 : i32
    %c0_i32_0 = arith.constant 0 : i32
    %c0_i32_1 = arith.constant 0 : i32
    return %c0_i32, %c0_i32_0 : i32, i32
  }
  func.func @transform_3(%arg0: i32) -> (i32, i32, i32) {
    %c0_i32 = arith.constant 0 : i32
    %c0_i32_0 = arith.constant 0 : i32
    %c0_i32_1 = arith.constant 0 : i32
    return %arg0, %c0_i32, %c0_i32_0 : i32, i32, i32
  }
}

</mosaic_0001>

<bundles_post_ra>
// kernel: tpu_custom_call.1
= control target key start
LH: loop header
LB: loop body
LE: loop exit
PB: predicated region body
PF: predicated region fallthrough
CT: control target
= control target key end

     0   :  { %8 = vsyncpa [#allocation3], 0  ;;  %s1036_s0 = inlined_call_operand.hbm [shape: f32[8,784], index: 0, kind: input, shape index: {}]   ;;  %s1037_s1 = inlined_call_operand.hbm [shape: bf16[784,128], index: 1, kind: input, shape index: {}]   ;;  %s1038_s2 = inlined_call_operand.vmem [shape: f32[1,128], index: 2, kind: input, shape index: {}]   ;;  %s1039_s3 = inlined_call_operand.hbm [shape: f32[1,1,8], index: 3, kind: output, shape index: {}]  }
   0x1   :  { %9 = vsyncpa [#allocation6], 0 }
   0x2   :  { %10 = vsyncpa [#allocation4], 0  ;;  %s961_s12 = smov [#allocation2]   ;;  %s962_s14 = smov [#allocation5]  }
   0x3   :  { %s17_s13 = sshll.u32 %s961_s12, 4  ;;  %s26_s15 = sshll.u32 %s962_s14, 4  ;;  %s18_s13 = int_to_ptr.vmem [resolvable:$true] %s17_s13  ;;  %s988_s15 = int_to_ptr.vmem [resolvable:$true] %s26_s15 }
   0x4   :  { %s889_s18 = scalar_lea.hbm %s1036_s0, 896 }
   0x5   :  { %p890_p0 = scmp.ne.s32.totalorder %s1036_s0, %s889_s18  ;;  %p893_p1 = scmp.lt.u32.totalorder %s889_s18, %s1036_s0 }
   0x7   :  { %p895_p2 = pnand %p893_p1, %p890_p0 }
   0x9   :  { %898 = shalt.err (!%p895_p2)
}
   0xa   :  { %s899_s23 = scalar_lea.vmem %s18_s13, 896  ;;  %p904_p4 = scmp.lt.s32.totalorder %s18_s13, %s18_s13 }
   0xb   :  { %p900_p3 = scmp.ne.s32.totalorder %s18_s13, %s899_s23  ;;  %p905_p5 = scmp.lt.s32.totalorder %s899_s23, %s899_s23 }
   0xd   :  { %p906_p6 = por %p905_p5, %p904_p4 }
   0xf   :  { %p907_p7 = pnand %p906_p6, %p900_p3 }
  0x11   :  { %910 = shalt.err (!%p907_p7)
}
  0x12   :  { %20 = dma.hbm_to_vmem [thread:$0]  %s1036_s0, 896, %s18_s13, [#allocation3]  }
  0x13   :  { %s911_s28 = scalar_lea.hbm %s1037_s1, 6272 }
  0x14   :  { %p912_p8 = scmp.ne.s32.totalorder %s1037_s1, %s911_s28  ;;  %p915_p9 = scmp.lt.u32.totalorder %s911_s28, %s1037_s1 }
  0x16   :  { %p917_p10 = pnand %p915_p9, %p912_p8 }
  0x18   :  { %920 = shalt.err (!%p917_p10)
}
  0x19   :  { %s921_s6 = scalar_lea.vmem %s988_s15, 6272  ;;  %p926_p12 = scmp.lt.s32.totalorder %s988_s15, %s988_s15 }
  0x1a   :  { %p922_p11 = scmp.ne.s32.totalorder %s988_s15, %s921_s6  ;;  %p927_p13 = scmp.lt.s32.totalorder %s921_s6, %s921_s6 }
  0x1c   :  { %p928_p0 = por %p927_p13, %p926_p12 }
  0x1e   :  { %p929_p1 = pnand %p928_p0, %p922_p11 }
  0x20   :  { %932 = shalt.err (!%p929_p1)
}
  0x21   :  { %s963_s0 = smov 64   ;;  %s964_s7 = smov 4  }
  0x22   :  { %32 = dma.hbm_to_vmem [thread:$0]  %s1037_s1, 6272, %s988_s15, [#allocation6], %s963_s0, %s963_s0, %s964_s7  }
  0x23   :  { %955 = dma.done.wait [#allocation3], 896  }
  0x24   :  { %956 = vsyncadd [#allocation3], 4294966400 }
  0x25   :  { %957 = dma.done.wait [#allocation6], 6272  }
  0x26   :  { %958 = vsyncadd [#allocation6], 4294961024  ;;  %v840_v0 = vld [vmem:[#allocation5 + $0x40] sm:$0xff]   ;;  %v844_v4 = vld [vmem:[#allocation5 + $0x48] sm:$0xff]   ;;  %v965_v41 = vmov 0.0   ;;  %vm966_vm0 = vmmov 0  }
  0x27   :  { %v841_v1 = vld [vmem:[#allocation5 + $0xc0] sm:$0xff]   ;;  %752 = vmatprep.subr.bf16.mxu0 %v840_v0  ;;  %v845_v5 = vld [vmem:[#allocation5 + $0xc8] sm:$0xff]   ;;  %v848_v8 = vld [vmem:[#allocation5 + $0x50] sm:$0xff]   ;;  %vm448_vm1 = vcmask 130048   ;;  %s967_s11 = smov [#allocation7]   ;;  %vm684_vm2 = vcmask 57344  }
  0x28   :  { %v842_v2 = vld [vmem:[#allocation5] sm:$0xff]   ;;  %774 = vmatprep.subr.bf16.mxu1 %v841_v1  ;;  %v846_v6 = vld [vmem:[#allocation5 + $0x8] sm:$0xff]   ;;  %v849_v9 = vld [vmem:[#allocation5 + $0xd0] sm:$0xff]   ;;  %s692_s12 = sshll.u32 %s967_s11, 4  ;;  %s693_s12 = int_to_ptr.vmem [resolvable:$true] %s692_s12 }
  0x29   :  { %v843_v3 = vld [vmem:[#allocation5 + $0x80] sm:$0xff]   ;;  %753 = vmatpush3.bf16.msra.mxu0 %v842_v2  ;;  %v847_v7 = vld [vmem:[#allocation5 + $0x88] sm:$0xff]   ;;  %v850_v10 = vld [vmem:[#allocation5 + $0x10] sm:$0xff]   ;;  %s933_s13 = scalar_lea.vmem %s693_s12, 16  ;;  %s937_s14 = scalar_lea.vmem %s693_s12, 32 }
  0x2a   :  { %775 = vmatpush3.bf16.msra.mxu1 %v843_v3  ;;  %754 = vmatprep.subr.bf16.mxu0 %v844_v4  ;;  %v851_v11 = vld [vmem:[#allocation5 + $0x90] sm:$0xff]   ;;  %v852_v12 = vld [vmem:[#allocation5 + $0x58] sm:$0xff]   ;;  %v856_v16 = vld [vmem:[#allocation5 + $0x60] sm:$0xff]   ;;  %p934_p2 = scmp.ne.s32.totalorder %s693_s12, %s933_s13  ;;  %p938_p3 = scmp.lt.s32.totalorder %s693_s12, %s693_s12 }
  0x2b   :  { %776 = vmatprep.subr.bf16.mxu1 %v845_v5  ;;  %v853_v13 = vld [vmem:[#allocation5 + $0xd8] sm:$0xff]   ;;  %v857_v17 = vld [vmem:[#allocation5 + $0xe0] sm:$0xff]   ;;  %v860_v20 = vld [vmem:[#allocation5 + $0x68] sm:$0xff]   ;;  %p939_p4 = scmp.lt.s32.totalorder %s937_s14, %s933_s13 }
  0x2c   :  { %v854_v14 = vld [vmem:[#allocation5 + $0x18] sm:$0xff]   ;;  %v858_v18 = vld [vmem:[#allocation5 + $0x20] sm:$0xff]   ;;  %v861_v21 = vld [vmem:[#allocation5 + $0xe8] sm:$0xff]  }
  0x2d   :  { %755 = vmatpush3.bf16.msra.mxu0 %v846_v6  ;;  %v855_v15 = vld [vmem:[#allocation5 + $0x98] sm:$0xff]   ;;  %v859_v19 = vld [vmem:[#allocation5 + $0xa0] sm:$0xff]   ;;  %v862_v22 = vld [vmem:[#allocation5 + $0x28] sm:$0xff]   ;;  %p940_p5 = por %p939_p4, %p938_p3 }
  0x2e   :  { %777 = vmatpush3.bf16.msra.mxu1 %v847_v7  ;;  %756 = vmatprep.subr.bf16.mxu0 %v848_v8  ;;  %v863_v23 = vld [vmem:[#allocation5 + $0xa8] sm:$0xff]   ;;  %v864_v24 = vld [vmem:[#allocation5 + $0x70] sm:$0xff]   ;;  %v868_v28 = vld [vmem:[#allocation5 + $0x78] sm:$0xff]  }
  0x2f   :  { %778 = vmatprep.subr.bf16.mxu1 %v849_v9  ;;  %v865_v25 = vld [vmem:[#allocation5 + $0xf0] sm:$0xff]   ;;  %v869_v29 = vld [vmem:[#allocation5 + $0xf8] sm:$0xff]   ;;  %v45_v33 = vld [vmem:[#allocation2 + $0x18] sm:$0xff]  ;;  %p941_p6 = pnand %p940_p5, %p934_p2 }
  0x30   :  { %v866_v26 = vld [vmem:[#allocation5 + $0x30] sm:$0xff]   ;;  %v870_v30 = vld [vmem:[#allocation5 + $0x38] sm:$0xff]   ;;  %v42_v34 = vld [vmem:[#allocation2] sm:$0xff]  ;;  %v52_v36 = vpack.c.bf16 %v45_v33, %v45_v33 }
  0x31   :  { %757 = vmatpush3.bf16.msra.mxu0 %v850_v10  ;;  %v867_v27 = vld [vmem:[#allocation5 + $0xb0] sm:$0xff]   ;;  %v871_v31 = vld [vmem:[#allocation5 + $0xb8] sm:$0xff]   ;;  %v49_v37 = vpack.c.bf16 %v42_v34, %v42_v34  ;;  %v872_v40 = vld [vmem:[#allocation5 + $0x140] sm:$0xff]  }
  0x32   :  { %779 = vmatpush3.bf16.msra.mxu1 %v851_v11  ;;  %758 = vmatprep.subr.bf16.mxu0 %v852_v12  ;;  %v43_v32 = vld [vmem:[#allocation2 + $0x8] sm:$0xff]  ;;  %v44_v38 = vld [vmem:[#allocation2 + $0x10] sm:$0xff]  ;;  %v873_v42 = vld [vmem:[#allocation5 + $0x100] sm:$0xff]  }
  0x33   :  { %780 = vmatprep.subr.bf16.mxu1 %v853_v13  ;;  %v50_v35 = vpack.c.bf16 %v43_v32, %v43_v32  ;;  %v51_v39 = vpack.c.bf16 %v44_v38, %v44_v38  ;;  %524 = vmatprep.mubr.bf16.mxu1 %v52_v36  ;;  %v874_v43 = vld [vmem:[#allocation5 + $0x148] sm:$0xff]   ;;  %v876_v45 = vld [vmem:[#allocation5 + $0x150] sm:$0xff]   ;;  %v878_v47 = vld [vmem:[#allocation5 + $0x158] sm:$0xff]  }
  0x34   :  { %v875_v44 = vld [vmem:[#allocation5 + $0x108] sm:$0xff]   ;;  %v877_v46 = vld [vmem:[#allocation5 + $0x110] sm:$0xff]   ;;  %v879_v48 = vld [vmem:[#allocation5 + $0x118] sm:$0xff]  }
  0x35   :  { %759 = vmatpush3.bf16.msra.mxu0 %v854_v14  ;;  %484 = vmatprep.mubr.bf16.mxu0 %v50_v35  ;;  %v880_v49 = vld [vmem:[#allocation5 + $0x160] sm:$0xff]   ;;  %v47_v50 = vld [vmem:[#allocation2 + $0x28] sm:$0xff]  ;;  %v882_v54 = vld [vmem:[#allocation5 + $0x168] sm:$0xff]  }
  0x36   :  { %781 = vmatpush3.bf16.msra.mxu1 %v855_v15  ;;  %760 = vmatprep.subr.bf16.mxu0 %v856_v16  ;;  %v881_v51 = vld [vmem:[#allocation5 + $0x120] sm:$0xff]   ;;  %v54_v52 = vpack.c.bf16 %v47_v50, %v47_v50  ;;  %v48_v55 = vld [vmem:[#allocation2 + $0x30] sm:$0xff]  ;;  %v883_v57 = vld [vmem:[#allocation5 + $0x128] sm:$0xff]  }
  0x37   :  { %782 = vmatprep.subr.bf16.mxu1 %v857_v17  ;;  %v888_v53 = vld [vmem:[#allocation5 + $0x180] sm:$0xff]   ;;  %v55_v56 = vpack.c.bf16 %v48_v55, %v48_v55  ;;  %v884_v58 = vld [vmem:[#allocation5 + $0x170] sm:$0xff]   ;;  %v886_v60 = vld [vmem:[#allocation5 + $0x178] sm:$0xff]  }
  0x38   :  { %v885_v59 = vld [vmem:[#allocation5 + $0x130] sm:$0xff]   ;;  %v887_v61 = vld [vmem:[#allocation5 + $0x138] sm:$0xff]   ;;  %v46_v62 = vld [vmem:[#allocation2 + $0x20] sm:$0xff] }
  0x39   :  { %761 = vmatpush3.bf16.msra.mxu0 %v858_v18  ;;  %v53_v63 = vpack.c.bf16 %v46_v62, %v46_v62 }
  0x3a   :  { %783 = vmatpush3.bf16.msra.mxu1 %v859_v19  ;;  %762 = vmatprep.subr.bf16.mxu0 %v860_v20 }
  0x3b   :  { %784 = vmatprep.subr.bf16.mxu1 %v861_v21 }
  0x3d   :  { %763 = vmatpush3.bf16.msra.mxu0 %v862_v22 }
  0x3e   :  { %785 = vmatpush3.bf16.msra.mxu1 %v863_v23  ;;  %764 = vmatprep.subr.bf16.mxu0 %v864_v24  ;;  %v613_v23 = vld [vmem:[%s1038_s2] sm:$0x1] }
  0x3f   :  { %786 = vmatprep.subr.bf16.mxu1 %v865_v25 }
  0x41   :  { %765 = vmatpush3.bf16.msra.mxu0 %v866_v26 }
  0x42   :  { %787 = vmatpush3.bf16.msra.mxu1 %v867_v27  ;;  %766 = vmatprep.subr.bf16.mxu0 %v868_v28 }
  0x43   :  { %788 = vmatprep.subr.bf16.mxu1 %v869_v29 }
  0x45   :  { %767 = vmatpush3.bf16.msra.mxu0 %v870_v30 }
  0x46   :  { %789 = vmatpush3.bf16.msra.mxu1 %v871_v31  ;;  %796 = vmatprep.subr.bf16.mxu0 %v872_v40 }
  0x47   :  { %822 = vmatprep.subr.bf16.mxu1 %v965_v41 }
  0x48   :  { %485 = vmatmul.mubr.bf16.vlgmr.msra.gmra.mrb[0].mxu0 %v49_v37 }
  0x49   :  { %525 = vmatmul.mubr.bf16.vlgmr.msra.gmra.mrb[0].mxu1 %v51_v39  ;;  %797 = vmatpush3.bf16.msra.mxu0 %v873_v42 }
  0x4a   :  { %824 = vmatprep.mubr.msk.bf16.mxu1 %vm966_vm0, %v965_v41  ;;  %798 = vmatprep.subr.bf16.mxu0 %v874_v43 }
  0x4b   :  { %564 = vmatprep.mubr.bf16.mxu0 %v54_v52  ;;  %823 = vmatpush3.bf16.msra.mxu1 %v888_v53 }
  0x4c   :  { %828 = vmatprep.subr.mxu1 %v965_v41 }
  0x4d   :  { %799 = vmatpush3.bf16.msra.mxu0 %v875_v44 }
  0x4e   :  { %800 = vmatprep.subr.bf16.mxu0 %v876_v45 }
  0x51   :  { %801 = vmatpush3.bf16.msra.mxu0 %v877_v46  ;;  %825 = vmatmul.mubr.msk.bf16.vlgmr.msra.gmra.mrb[4].mxu1 %vm448_vm1, %v55_v56 }
  0x52   :  { %802 = vmatprep.subr.bf16.mxu0 %v878_v47  ;;  %830 = vmatprep.mubr.msk.f32.mxu1 %vm966_vm0, %v965_v41 }
  0x55   :  { %803 = vmatpush3.bf16.msra.mxu0 %v879_v48 }
  0x56   :  { %804 = vmatprep.subr.bf16.mxu0 %v880_v49 }
  0x59   :  { %805 = vmatpush3.bf16.msra.mxu0 %v881_v51 }
  0x5a   :  { %806 = vmatprep.subr.bf16.mxu0 %v882_v54 }
  0x5d   :  { %807 = vmatpush3.bf16.msra.mxu0 %v883_v57 }
  0x5e   :  { %808 = vmatprep.subr.bf16.mxu0 %v884_v58 }
  0x61   :  { %809 = vmatpush3.bf16.msra.mxu0 %v885_v59 }
  0x62   :  { %810 = vmatprep.subr.bf16.mxu0 %v886_v60 }
  0x65   :  { %811 = vmatpush3.bf16.msra.mxu0 %v887_v61 }
  0x68   :  { %565 = vmatmul.mubr.bf16.vlgmr.msra.gmra.mrb[4].mxu0 %v53_v63 }
 0x11b   :  { %v768_v0 = vpop.f32.mrb[0].mxu0 }
 0x11c   :  { %v790_v1 = vpop.f32.mrb[0].mxu1  ;;  %v769_v2 = vpop.f32.mrb[1].mxu0 }
 0x11d   :  { %v791_v3 = vpop.f32.mrb[1].mxu1  ;;  %v770_v4 = vadd.f32 %v769_v2, %v768_v0  ;;  %v771_v6 = vpop.f32.mrb[2].mxu0 }
 0x11e   :  { %v792_v5 = vadd.f32 %v791_v3, %v790_v1  ;;  %v793_v7 = vpop.f32.mrb[2].mxu1  ;;  %v772_v8 = vpop.f32.mrb[3].mxu0 }
 0x11f   :  { %v794_v9 = vpop.f32.mrb[3].mxu1 }
 0x120   :  { %v527_v10 = vadd.f32 %v792_v5, %v770_v4 }
 0x124   :  { %v606_v11 = vpop.f32.mrb[4].mxu1 }
 0x125   :  { %v826_v12 = vpop.f32.mrb[5].mxu1 }
 0x126   :  { %v609_v13 = vpop.f32.mrb[6].mxu1 }
 0x127   :  { %v827_v14 = vpop.f32.mrb[7].mxu1 }
 0x13b   :  { %v812_v15 = vpop.f32.mrb[4].mxu0 }
 0x13c   :  { %v813_v16 = vpop.f32.mrb[5].mxu0 }
 0x13d   :  { %v814_v17 = vadd.f32 %v813_v16, %v812_v15  ;;  %v815_v18 = vpop.f32.mrb[6].mxu0 }
 0x13e   :  { %v816_v19 = vpop.f32.mrb[7].mxu0 }
 0x13f   :  { %v567_v20 = vadd.f32 %v814_v17, %v527_v10 }
 0x141   :  { %v607_v21 = vadd.f32 %v606_v11, %v567_v20 }
 0x143   :  { %v612_v22 = vmax.f32 %v607_v21, 0.0 }
 0x145   :  { %829 = vmatpush3.xpose.msra.mxu1 %v612_v22 }
 0x148   :  { %831 = vmatmul.mubr.f32.vlgmr.msra.gmra.mrb[8].mxu1 %v613_v23 }
 0x21b   :  { %v680_v24 = vpop.f32.mrb[8].mxu1 }
 0x21c   :  { %v832_v25 = vpop.f32.mrb[9].mxu1  ;;  %685 = vst.msk [vmem:[#allocation7] sm:$0x1] %vm684_vm2, %v680_v24 }
 0x21d   :  { %944 = shalt.err (!%p941_p6)
}
 0x21e   :  { %s945_s2 = scalar_lea.hbm %s1039_s3, 16 }
 0x21f   :  { %p946_p7 = scmp.ne.s32.totalorder %s1039_s3, %s945_s2  ;;  %p949_p8 = scmp.lt.u32.totalorder %s945_s2, %s1039_s3 }
 0x221   :  { %p951_p9 = pnand %p949_p8, %p946_p7 }
 0x223   :  { %954 = shalt.err (!%p951_p9)
}
 0x224   :  { %695 = dma.vmem_to_hbm [thread:$0]  %s693_s12, 16, %s1039_s3, [#allocation4]  }
 0x225   :  { %959 = dma.done.wait [#allocation4], 16  }
 0x226   :  { %960 = vsyncadd [#allocation4], 4294967280 }
 0x227   :  { %699 = vsyncpa [#allocation3], 1 }
 0x228   :  { %700 = vsyncpa [#allocation6], 1 }
 0x229   :  { %701 = vsyncpa [#allocation4], 1 }

</bundles_post_ra>
